<compile_context>
chip_gen: v7x
topology: tpu7x:2x2x1
jax: 0.10.0
libtpu: 0.0.40
codegen_flags: <defaults>
</compile_context>

<pallas_src>
import functools

import jax
import jax.numpy as jnp
from jax.experimental import pallas as pl
from jax.experimental.pallas import tpu as pltpu


def _se_kernel(x_ref, e_ref, g_ref, gt_ref, w1t_ref, b1_ref, w2t_ref, b2_ref,
               o_ref, *, inv_hw):
    # x_ref/o_ref: (Rb, HW) with Rb = Nb*C      e_ref:  (Rb, C)  one-hot channel id
    # g_ref: (Rb, Nb) one-hot sample id         gt_ref: (Nb, Rb) = g_ref.T
    # w1t_ref: (C, Hid)  b1_ref: (1, Hid)       w2t_ref: (Hid, C)  b2_ref: (1, C)
    x = x_ref[...]
    e = e_ref[...]

    # squeeze: global average pool over the spatial (lane) axis, f32 accumulate
    pooled = jnp.sum(x, axis=-1, dtype=jnp.float32, keepdims=True) * inv_hw   # (Rb, 1)

    # rows -> (Nb, C) via the one-hot sample matmul (no in-kernel reshape)
    pooled_nc = jnp.dot(gt_ref[...], pooled * e,
                        preferred_element_type=jnp.float32)                   # (Nb, C)

    # excitation: the two 1x1 convs on the pooled vectors are tiny MXU matmuls
    h = jnp.dot(pooled_nc, w1t_ref[...],
                preferred_element_type=jnp.float32) + b1_ref[...]
    h = jnp.maximum(h, 0.0)                                                    # ReLU
    s = jnp.dot(h, w2t_ref[...],
                preferred_element_type=jnp.float32) + b2_ref[...]
    s = jax.nn.sigmoid(s)                                                      # (Nb, C)

    # broadcast the gate back to rows: gate[r] = s[sample(r), channel(r)]
    gate = jnp.sum(e * jnp.dot(g_ref[...], s, preferred_element_type=jnp.float32),
                   axis=-1, keepdims=True)                                     # (Rb, 1)

    # scale in the input dtype (no full-block f32 temp); exact for f32 inputs
    o_ref[...] = (x * gate.astype(x.dtype)).astype(o_ref.dtype)


def _round_up(v, m):
    return -(-v // m) * m


def _sublane_tile(dtype):
    # 8 rows per f32 vreg tile, 16 for bf16, 32 for int8/fp8
    return 8 * max(1, 4 // jnp.dtype(dtype).itemsize)


def _block_footprint_bytes(nb, c, hw, hid, dtype):
    """Conservative padded VMEM footprint of one grid step: double-buffered
    x / out blocks + (double-buffered) aux matrices + f32 intermediates."""
    eb = jnp.dtype(dtype).itemsize
    rb = nb * c
    rows = _round_up(rb, _sublane_tile(dtype))
    lanes = _round_up(hw, 128)
    x_block = rows * lanes * eb
    rows32 = _round_up(rb, 8)
    c_l, nb_l, hid_l = _round_up(c, 128), _round_up(nb, 128), _round_up(hid, 128)
    aux = 4 * (rows32 * c_l                                   # E
               + rows32 * nb_l                                # G
               + _round_up(nb, 8) * _round_up(rb, 128)        # G^T
               + _round_up(c, 8) * hid_l + 8 * hid_l          # W1^T, b1
               + _round_up(hid, 8) * c_l + 8 * c_l)           # W2^T, b2
    interm = 4 * 2 * rows32 * c_l                             # pooled*E, G@s temps
    return 4 * x_block + 2 * aux + interm


def _pick_batch_tile(n, c, hw, hid, dtype, vmem_budget_bytes):
    """Pick Nb (samples per grid step): must divide N and fit the padded VMEM
    budget; prefer sublane-dense rows (Nb*C % tile == 0), then an even step
    count >= 4 (v7x 2-TC balance + pipeline overlap), then the largest block."""
    sub = _sublane_tile(dtype)
    divisors = [d for d in range(1, n + 1) if n % d == 0]
    fitting = [d for d in divisors
               if _block_footprint_bytes(d, c, hw, hid, dtype) <= vmem_budget_bytes]
    if not fitting:
        # TODO(synk): HW-tiled two-pass (pool-then-scale) fallback for feature
        # maps whose single-sample slab exceeds VMEM (hits v7x's 64 MiB first).
        return 1

    def score(nb):
        steps = n // nb
        return ((nb * c) % sub == 0,              # dense sublanes
                steps >= 4 and steps % 2 == 0,    # balanced TCs + overlap
                steps >= 2 and steps % 2 == 0,
                nb)                               # biggest block
    return max(fitting, key=score)


def _vmem_limits():
    """(block-sizing budget, vmem_limit_bytes) chosen per TPU generation."""
    cap = None
    try:
        info = pltpu.get_tpu_info()
        for name in ("vmem_capacity_bytes", "vmem_size_bytes", "vmem_bytes"):
            cap = getattr(info, name, None)
            if cap:
                break
    except Exception:
        cap = None
    if cap and int(cap) >= (100 << 20):           # v5e / v6e: 128 MiB physical
        return 72 << 20, 96 << 20
    return 24 << 20, 40 << 20                     # v7x-sized (64 MiB) or unknown


def nf_se_conv_block(x_nchw, w1, b1, w2, b2):
    """x_nchw: (N, C, H, W); w1: (Hid, C); b1: (Hid,); w2: (Cout, Hid); b2: (Cout,)."""
    N, C, H, W = x_nchw.shape
    HW = H * W
    Hid = w1.shape[0]
    Cout = w2.shape[0]
    assert Cout == C, "x * y broadcast in the reference requires out_channels == in_channels"

    x_dtype = x_nchw.dtype
    elem_bytes = jnp.dtype(x_dtype).itemsize
    x = x_nchw.reshape(N * C, HW)                 # contiguous: layout-only reshape

    budget, vmem_limit = _vmem_limits()
    Nb = _pick_batch_tile(N, C, HW, Hid, x_dtype, budget)
    Rb = Nb * C
    grid = (N // Nb,)

    # One-hot row->sample / row->channel membership matrices for one block
    # (identical for every block because Nb divides N); kept VMEM-resident.
    sample_id = jnp.repeat(jnp.arange(Nb, dtype=jnp.int32), C)                # (Rb,)
    chan_id = jnp.tile(jnp.arange(C, dtype=jnp.int32), Nb)                    # (Rb,)
    g_mat = (sample_id[:, None] == jnp.arange(Nb, dtype=jnp.int32)[None, :]
             ).astype(jnp.float32)                                            # (Rb, Nb)
    e_mat = (chan_id[:, None] == jnp.arange(C, dtype=jnp.int32)[None, :]
             ).astype(jnp.float32)                                            # (Rb, C)
    gt_mat = g_mat.T                                                          # (Nb, Rb)

    w1t = jnp.asarray(w1, jnp.float32).T                                      # (C, Hid)
    w2t = jnp.asarray(w2, jnp.float32).T                                      # (Hid, C)
    b1_2d = jnp.asarray(b1, jnp.float32).reshape(1, Hid)
    b2_2d = jnp.asarray(b2, jnp.float32).reshape(1, C)

    kernel = functools.partial(_se_kernel, inv_hw=1.0 / float(HW))

    cost = pl.CostEstimate(
        flops=2 * N * C * HW + 2 * N * C * Hid + 2 * N * Hid * C + 4 * N * C * C,
        transcendentals=N * C,
        bytes_accessed=2 * N * C * HW * elem_bytes
        + 4 * (Rb * (C + Nb) + Nb * Rb + C * Hid + Hid + Hid * C + C),
    )

    out = pl.pallas_call(
        kernel,
        out_shape=jax.ShapeDtypeStruct((N * C, HW), x_dtype),
        grid_spec=pltpu.PrefetchScalarGridSpec(
            num_scalar_prefetch=0,
            grid=grid,
            in_specs=[
                pl.BlockSpec((Rb, HW), lambda b: (b, 0)),
                # Aux / weights: constant block index -> resident, no re-DMA.
                pl.BlockSpec((Rb, C), lambda b: (0, 0)),
                pl.BlockSpec((Rb, Nb), lambda b: (0, 0)),
                pl.BlockSpec((Nb, Rb), lambda b: (0, 0)),
                pl.BlockSpec((C, Hid), lambda b: (0, 0)),
                pl.BlockSpec((1, Hid), lambda b: (0, 0)),
                pl.BlockSpec((Hid, C), lambda b: (0, 0)),
                pl.BlockSpec((1, C), lambda b: (0, 0)),
            ],
            out_specs=pl.BlockSpec((Rb, HW), lambda b: (b, 0)),
        ),
        compiler_params=pltpu.CompilerParams(
            dimension_semantics=("parallel",),
            vmem_limit_bytes=vmem_limit,
        ),
        cost_estimate=cost,
    )(x, e_mat, g_mat, gt_mat, w1t, b1_2d, w2t, b2_2d)

    return out.reshape(N, C, H, W)


def reference(x, w1, b1, w2, b2):
    # pure-JAX reference of the PyTorch forward
    xf = x.astype(jnp.float32)
    pooled = jnp.mean(xf, axis=(2, 3))                                        # (N, C)
    h = jnp.maximum(pooled @ jnp.asarray(w1, jnp.float32).T + b1, 0.0)        # (N, Hid)
    s = jax.nn.sigmoid(h @ jnp.asarray(w2, jnp.float32).T + b2)               # (N, C)
    return (xf * s[:, :, None, None]).astype(x.dtype)


if __name__ == "__main__":
    key = jax.random.PRNGKey(0)
    N, C, H, W = 2, 4, 16, 16
    se_rate = 0.5
    Hid = max(1, int(C * se_rate))
    Cout = C  # required for the x * y broadcast in the reference module

    kx, k1, k2, k3, k4 = jax.random.split(key, 5)
    x = jax.random.normal(kx, (N, C, H, W), jnp.float32)
    # Conv2d(C, Hid, kernel_size=1) weight (Hid, C, 1, 1) -> squeeze to (Hid, C)
    w1 = jax.random.normal(k1, (Hid, C), jnp.float32) * 0.1
    b1 = jax.random.normal(k2, (Hid,), jnp.float32) * 0.1
    w2 = jax.random.normal(k3, (Cout, Hid), jnp.float32) * 0.1
    b2 = jax.random.normal(k4, (Cout,), jnp.float32) * 0.1

    out = nf_se_conv_block(x, w1, b1, w2, b2)
    out = jax.block_until_ready(out)

    ref = reference(x, w1, b1, w2, b2)
    assert out.dtype == x.dtype
    assert jnp.allclose(out, ref, atol=1e-5, rtol=1e-5), "mismatch vs reference"
    print("KERNEL_OK")
</pallas_src>

<mosaic_0001>
module attributes {stable_mosaic.version = 11 : i64} {
  func.func @_se_kernel(%arg0: i32, %arg1: memref<8x256xf32, #tpu.memory_space<vmem>>, %arg2: memref<8x4xf32, #tpu.memory_space<vmem>>, %arg3: memref<8x2xf32, #tpu.memory_space<vmem>>, %arg4: memref<2x8xf32, #tpu.memory_space<vmem>>, %arg5: memref<4x2xf32, #tpu.memory_space<vmem>>, %arg6: memref<1x2xf32, #tpu.memory_space<vmem>>, %arg7: memref<2x4xf32, #tpu.memory_space<vmem>>, %arg8: memref<1x4xf32, #tpu.memory_space<vmem>>, %arg9: memref<8x256xf32, #tpu.memory_space<vmem>>) attributes {dimension_semantics = [#tpu.dimension_semantics<parallel>], iteration_bounds = array<i64: 1>, scalar_prefetch = 0 : i64, scratch_operands = 0 : i64, tpu.core_type = #tpu.core_type<tc>, window_params = [{transform_indices = @transform_0, window_bounds = array<i64: 8, 256>}, {pipeline_mode = #tpu.pipeline_mode<synchronous>, transform_indices = @transform_1, window_bounds = array<i64: 8, 4>}, {pipeline_mode = #tpu.pipeline_mode<synchronous>, transform_indices = @transform_2, window_bounds = array<i64: 8, 2>}, {pipeline_mode = #tpu.pipeline_mode<synchronous>, transform_indices = @transform_3, window_bounds = array<i64: 2, 8>}, {pipeline_mode = #tpu.pipeline_mode<synchronous>, transform_indices = @transform_4, window_bounds = array<i64: 4, 2>}, {pipeline_mode = #tpu.pipeline_mode<synchronous>, transform_indices = @transform_5, window_bounds = array<i64: 1, 2>}, {pipeline_mode = #tpu.pipeline_mode<synchronous>, transform_indices = @transform_6, window_bounds = array<i64: 2, 4>}, {pipeline_mode = #tpu.pipeline_mode<synchronous>, transform_indices = @transform_7, window_bounds = array<i64: 1, 4>}, {transform_indices = @transform_8, window_bounds = array<i64: 8, 256>}]} {
    %c0 = arith.constant 0 : index
    %c0_0 = arith.constant 0 : index
    %0 = vector.load %arg1[%c0, %c0_0] : memref<8x256xf32, #tpu.memory_space<vmem>>, vector<8x256xf32>
    %c0_1 = arith.constant 0 : index
    %c0_2 = arith.constant 0 : index
    %1 = vector.load %arg2[%c0_1, %c0_2] : memref<8x4xf32, #tpu.memory_space<vmem>>, vector<8x4xf32>
    %cst = arith.constant dense<0.000000e+00> : vector<8xf32>
    %2 = vector.multi_reduction <add>, %0, %cst [1] : vector<8x256xf32> to vector<8xf32>
    %3 = vector.shape_cast %2 : vector<8xf32> to vector<8x1xf32>
    %cst_3 = arith.constant 3.906250e-03 : f32
    %4 = vector.broadcast %cst_3 : f32 to vector<8x1xf32>
    %5 = arith.mulf %3, %4 : vector<8x1xf32>
    %c0_4 = arith.constant 0 : index
    %c0_5 = arith.constant 0 : index
    %6 = vector.load %arg4[%c0_4, %c0_5] : memref<2x8xf32, #tpu.memory_space<vmem>>, vector<2x8xf32>
    %7 = vector.broadcast %5 : vector<8x1xf32> to vector<8x4xf32>
    %8 = arith.mulf %7, %1 : vector<8x4xf32>
    %cst_6 = arith.constant dense<0.000000e+00> : vector<2x4xf32>
    %9 = tpu.matmul %6, %8, %cst_6 {dimension_numbers = #tpu.dot_dimension_numbers<[1], [0], [0], [1], [0, 0, 1, 1], [], []>} : vector<2x8xf32>, vector<8x4xf32>, vector<2x4xf32> -> vector<2x4xf32>
    %c0_7 = arith.constant 0 : index
    %c0_8 = arith.constant 0 : index
    %10 = vector.load %arg5[%c0_7, %c0_8] : memref<4x2xf32, #tpu.memory_space<vmem>>, vector<4x2xf32>
    %cst_9 = arith.constant dense<0.000000e+00> : vector<2x2xf32>
    %11 = tpu.matmul %9, %10, %cst_9 {dimension_numbers = #tpu.dot_dimension_numbers<[1], [0], [0], [1], [0, 0, 1, 1], [], []>} : vector<2x4xf32>, vector<4x2xf32>, vector<2x2xf32> -> vector<2x2xf32>
    %c0_10 = arith.constant 0 : index
    %c0_11 = arith.constant 0 : index
    %12 = vector.load %arg6[%c0_10, %c0_11] : memref<1x2xf32, #tpu.memory_space<vmem>>, vector<1x2xf32>
    %13 = vector.broadcast %12 : vector<1x2xf32> to vector<2x2xf32>
    %14 = arith.addf %11, %13 : vector<2x2xf32>
    %cst_12 = arith.constant 0.000000e+00 : f32
    %15 = vector.broadcast %cst_12 : f32 to vector<2x2xf32>
    %16 = arith.maximumf %14, %15 : vector<2x2xf32>
    %c0_13 = arith.constant 0 : index
    %c0_14 = arith.constant 0 : index
    %17 = vector.load %arg7[%c0_13, %c0_14] : memref<2x4xf32, #tpu.memory_space<vmem>>, vector<2x4xf32>
    %cst_15 = arith.constant dense<0.000000e+00> : vector<2x4xf32>
    %18 = tpu.matmul %16, %17, %cst_15 {dimension_numbers = #tpu.dot_dimension_numbers<[1], [0], [0], [1], [0, 0, 1, 1], [], []>} : vector<2x2xf32>, vector<2x4xf32>, vector<2x4xf32> -> vector<2x4xf32>
    %c0_16 = arith.constant 0 : index
    %c0_17 = arith.constant 0 : index
    %19 = vector.load %arg8[%c0_16, %c0_17] : memref<1x4xf32, #tpu.memory_space<vmem>>, vector<1x4xf32>
    %20 = vector.broadcast %19 : vector<1x4xf32> to vector<2x4xf32>
    %21 = arith.addf %18, %20 : vector<2x4xf32>
    %22 = arith.negf %21 : vector<2x4xf32>
    %23 = math.exp %22 : vector<2x4xf32>
    %cst_18 = arith.constant 1.000000e+00 : f32
    %24 = vector.broadcast %cst_18 : f32 to vector<2x4xf32>
    %25 = arith.addf %24, %23 : vector<2x4xf32>
    %26 = arith.divf %24, %25 : vector<2x4xf32>
    %c0_19 = arith.constant 0 : index
    %c0_20 = arith.constant 0 : index
    %27 = vector.load %arg3[%c0_19, %c0_20] : memref<8x2xf32, #tpu.memory_space<vmem>>, vector<8x2xf32>
    %cst_21 = arith.constant dense<0.000000e+00> : vector<8x4xf32>
    %28 = tpu.matmul %27, %26, %cst_21 {dimension_numbers = #tpu.dot_dimension_numbers<[1], [0], [0], [1], [0, 0, 1, 1], [], []>} : vector<8x2xf32>, vector<2x4xf32>, vector<8x4xf32> -> vector<8x4xf32>
    %29 = arith.mulf %1, %28 : vector<8x4xf32>
    %cst_22 = arith.constant dense<0.000000e+00> : vector<8xf32>
    %30 = vector.multi_reduction <add>, %29, %cst_22 [1] : vector<8x4xf32> to vector<8xf32>
    %31 = vector.shape_cast %30 : vector<8xf32> to vector<8x1xf32>
    %32 = vector.broadcast %31 : vector<8x1xf32> to vector<8x256xf32>
    %33 = arith.mulf %0, %32 : vector<8x256xf32>
    %c0_23 = arith.constant 0 : index
    %c0_24 = arith.constant 0 : index
    %34 = vector.load %arg9[%c0_23, %c0_24] : memref<8x256xf32, #tpu.memory_space<vmem>>, vector<8x256xf32>
    tpu.vector_store %arg9[%c0_23, %c0_24], %33 {strides = array<i32>} : memref<8x256xf32, #tpu.memory_space<vmem>>, vector<8x256xf32>,
    return
  }
  func.func @transform_0(%arg0: i32) -> (i32, i32) {
    %c0_i32 = arith.constant 0 : i32
    %c0_i32_0 = arith.constant 0 : i32
    return %arg0, %c0_i32 : i32, i32
  }
  func.func @transform_1(%arg0: i32) -> (i32, i32) {
    %c0_i32 = arith.constant 0 : i32
    %c0_i32_0 = arith.constant 0 : i32
    %c0_i32_1 = arith.constant 0 : i32
    return %c0_i32, %c0_i32_0 : i32, i32
  }
  func.func @transform_2(%arg0: i32) -> (i32, i32) {
    %c0_i32 = arith.constant 0 : i32
    %c0_i32_0 = arith.constant 0 : i32
    %c0_i32_1 = arith.constant 0 : i32
    return %c0_i32, %c0_i32_0 : i32, i32
  }
  func.func @transform_3(%arg0: i32) -> (i32, i32) {
    %c0_i32 = arith.constant 0 : i32
    %c0_i32_0 = arith.constant 0 : i32
    %c0_i32_1 = arith.constant 0 : i32
    return %c0_i32, %c0_i32_0 : i32, i32
  }
  func.func @transform_4(%arg0: i32) -> (i32, i32) {
    %c0_i32 = arith.constant 0 : i32
    %c0_i32_0 = arith.constant 0 : i32
    %c0_i32_1 = arith.constant 0 : i32
    return %c0_i32, %c0_i32_0 : i32, i32
  }
  func.func @transform_5(%arg0: i32) -> (i32, i32) {
    %c0_i32 = arith.constant 0 : i32
    %c0_i32_0 = arith.constant 0 : i32
    %c0_i32_1 = arith.constant 0 : i32
    return %c0_i32, %c0_i32_0 : i32, i32
  }
  func.func @transform_6(%arg0: i32) -> (i32, i32) {
    %c0_i32 = arith.constant 0 : i32
    %c0_i32_0 = arith.constant 0 : i32
    %c0_i32_1 = arith.constant 0 : i32
    return %c0_i32, %c0_i32_0 : i32, i32
  }
  func.func @transform_7(%arg0: i32) -> (i32, i32) {
    %c0_i32 = arith.constant 0 : i32
    %c0_i32_0 = arith.constant 0 : i32
    %c0_i32_1 = arith.constant 0 : i32
    return %c0_i32, %c0_i32_0 : i32, i32
  }
  func.func @transform_8(%arg0: i32) -> (i32, i32) {
    %c0_i32 = arith.constant 0 : i32
    %c0_i32_0 = arith.constant 0 : i32
    return %arg0, %c0_i32 : i32, i32
  }
}

</mosaic_0001>

<bundles_post_ra>
// kernel: tpu_custom_call.1
= control target key start
LH: loop header
LB: loop body
LE: loop exit
PB: predicated region body
PF: predicated region fallthrough
CT: control target
= control target key end

     0   :  { %s555_s0 = inlined_call_operand.vmem [shape: f32[8,256], index: 0, kind: input, shape index: {}]   ;;  %s556_s1 = inlined_call_operand.vmem [shape: f32[8,4], index: 1, kind: input, shape index: {}]   ;;  %s557_s2 = inlined_call_operand.vmem [shape: f32[8,2], index: 2, kind: input, shape index: {}]   ;;  %s558_s3 = inlined_call_operand.vmem [shape: f32[2,8], index: 3, kind: input, shape index: {}]   ;;  %s559_s4 = inlined_call_operand.vmem [shape: f32[4,2], index: 4, kind: input, shape index: {}]   ;;  %s560_s5 = inlined_call_operand.vmem [shape: f32[1,2], index: 5, kind: input, shape index: {}]   ;;  %s561_s6 = inlined_call_operand.vmem [shape: f32[2,4], index: 6, kind: input, shape index: {}]   ;;  %s562_s7 = inlined_call_operand.vmem [shape: f32[1,4], index: 7, kind: input, shape index: {}]   ;;  %s563_s8 = inlined_call_operand.hbm [shape: f32[8,256], index: 8, kind: output, shape index: {}]  }
   0x1   :  { %v30_v0 = vld [vmem:[%s555_s0] sm:$0xff]  ;;  %v31_v1 = vld [vmem:[%s555_s0 + $0x8] sm:$0xff] }
   0x2   :  { %13 = vsyncpa [#allocation3], 0  ;;  %v33_v2 = vadd.f32 %v31_v1, %v30_v0  ;;  %v460_v3 = vmov 0.0   ;;  %vm461_vm0 = vmmov 0   ;;  %v32_v5 = vld [vmem:[%s556_s1] sm:$0xff]  ;;  %vm39_vm1 = vcmask 64512  }
   0x3   :  { %409 = vmatprep.subr.mxu0 %v460_v3  ;;  %414 = vmatprep.subr.mxu1 %v460_v3  ;;  %v37_v8 = vld [vmem:[%s558_s3] sm:$0x3]  ;;  %vm125_vm2 = vcmask 1043456   ;;  %vm121_vm3 = vcmask 31744   ;;  %vm212_vm4 = vcmask 1041408   ;;  %vm208_vm5 = vcmask 15360  }
   0x4   :  { %34 = vadd.xlane.f32.xlu0 %v33_v2  ;;  %411 = vmatprep.mubr.msk.f32.mxu0 %vm461_vm0, %v460_v3  ;;  %v113_v9 = vld [vmem:[%s559_s4] sm:$0xf] }
   0x5   :  { %416 = vmatprep.mubr.msk.f32.mxu1 %vm461_vm0, %v460_v3  ;;  %415 = vmatpush3.msk.msra.mxu1 %vm125_vm2, %v113_v9  ;;  %v200_v12 = vld [vmem:[%s561_s6] sm:$0x3] }
   0x6   :  { %424 = vmatprep.subr.mxu1 %v460_v3  ;;  %v392_v13 = vld [vmem:[%s560_s5] ss:$0 sm:$0xff] }
   0x7   :  { %v395_v18 = vld [vmem:[%s562_s7] ss:$0 sm:$0xff]  ;;  %s462_s7 = smov [#allocation2]  }
   0x8   :  { %v292_v25 = vld [vmem:[%s557_s2] sm:$0xff]  ;;  %s383_s17 = sshll.u32 %s462_s7, 4  ;;  %s384_s17 = int_to_ptr.vmem [resolvable:$true] %s383_s17 }
   0x9   :  { %s436_s18 = scalar_lea.vmem %s384_s17, 256  ;;  %p441_p1 = scmp.lt.s32.totalorder %s384_s17, %s384_s17 }
   0xa   :  { %p437_p0 = scmp.ne.s32.totalorder %s384_s17, %s436_s18  ;;  %p442_p2 = scmp.lt.s32.totalorder %s436_s18, %s436_s18 }
   0xc   :  { %p443_p3 = por %p442_p2, %p441_p1 }
   0xe   :  { %p444_p4 = pnand %p443_p3, %p437_p0 }
  0x91   :  { %v35_v4 = vpop.xlane.xlu0 %34 }
  0x92   :  { %v36_v6 = vmul.f32 0.00390625, %v35_v4 }
  0x94   :  { %v38_v7 = vmul.f32 %v36_v6, %v32_v5 }
  0x96   :  { %410 = vmatpush3.msra.mxu0 %v38_v7 }
  0x97   :  { %412 = vmatmul.mubr.msk.f32.vlgmr.msra.gmra.mrb[0].mxu0 %vm39_vm1, %v37_v8  ;;  %419 = vmatprep.subr.mxu0 %v460_v3 }
  0x98   :  { %421 = vmatprep.mubr.msk.f32.mxu0 %vm461_vm0, %v460_v3  ;;  %420 = vmatpush3.msk.msra.mxu0 %vm212_vm4, %v200_v12 }
 0x16a   :  { %v109_v10 = vpop.f32.mrb[0].mxu0 }
 0x16b   :  { %v413_v11 = vpop.f32.mrb[1].mxu0  ;;  %417 = vmatmul.mubr.msk.f32.vlgmr.msra.gmra.mrb[0].mxu1 %vm121_vm3, %v109_v10 }
 0x16c   :  { %426 = vmatprep.mubr.msk.f32.mxu1 %vm461_vm0, %v460_v3 }
 0x23e   :  { %v195_v14 = vpop.f32.mrb[0].mxu1 }
 0x23f   :  { %v196_v15 = vadd.f32 %v392_v13, %v195_v14  ;;  %v418_v16 = vpop.f32.mrb[1].mxu1 }
 0x241   :  { %v199_v17 = vmax.f32 %v196_v15, 0.0 }
 0x243   :  { %422 = vmatmul.mubr.msk.f32.vlgmr.msra.gmra.mrb[2].mxu0 %vm208_vm5, %v199_v17 }
 0x316   :  { %v282_v19 = vpop.f32.mrb[2].mxu0 }
 0x317   :  { %v283_v20 = vadd.f32 %v395_v18, %v282_v19  ;;  %v423_v21 = vpop.f32.mrb[3].mxu0 }
 0x319   :  { %v398_v22 = vmul.f32 -1.442695, %v283_v20 }
 0x31b   :  { %432 = vpow2.f32 %v398_v22 }
 0x325   :  { %v433_v23 = vpop.eup %432 }
 0x326   :  { %v289_v24 = vadd.f32 1.0, %v433_v23 }
 0x328   :  { %434 = vrcp.f32 %v289_v24 }
 0x332   :  { %v435_v26 = vpop.eup %434 }
 0x333   :  { %425 = vmatpush3.msk.msra.mxu1 %vm212_vm4, %v435_v26 }
 0x334   :  { %427 = vmatmul.mubr.msk.f32.vlgmr.msra.gmra.mrb[2].mxu1 %vm208_vm5, %v292_v25 }
 0x407   :  { %v365_v27 = vpop.f32.mrb[2].mxu1 }
 0x408   :  { %v369_v28 = vmul.f32 %v365_v27, %v32_v5  ;;  %v428_v29 = vpop.f32.mrb[3].mxu1 }
 0x40a   :  { %v370_v30 = vsel %vm121_vm3, %v369_v28, 0.0 }
 0x40b   :  { %371 = vadd.xlane.f32.xlu0 %v370_v30 }
 0x498   :  { %v372_v31 = vpop.xlane.xlu0 %371 }
 0x499   :  { %v373_v32 = vmul.f32 %v372_v31, %v30_v0  ;;  %v374_v33 = vmul.f32 %v372_v31, %v31_v1 }
 0x49b   :  { %375 = vst [vmem:[#allocation2] sm:$0xff] %v373_v32  ;;  %376 = vst [vmem:[#allocation2 + $0x8] sm:$0xff] %v374_v33 }
 0x49c   :  { %447 = shalt.err (!%p444_p4)
}
 0x49d   :  { %s448_s20 = scalar_lea.hbm %s563_s8, 256 }
 0x49e   :  { %p449_p5 = scmp.ne.s32.totalorder %s563_s8, %s448_s20  ;;  %p452_p6 = scmp.lt.u32.totalorder %s448_s20, %s563_s8 }
 0x4a0   :  { %p454_p7 = pnand %p452_p6, %p449_p5 }
 0x4a2   :  { %457 = shalt.err (!%p454_p7)
}
 0x4a3   :  { %386 = dma.vmem_to_hbm [thread:$0]  %s384_s17, 256, %s563_s8, [#allocation3]  }
 0x4a4   :  { %458 = dma.done.wait [#allocation3], 256  }
 0x4a5   :  { %459 = vsyncadd [#allocation3], 4294967040 }
 0x4a6   :  { %390 = vsyncpa [#allocation3], 1 }

</bundles_post_ra>
